<compile_context>
chip_gen: v7x
topology: tpu7x:2x2x1
jax: 0.10.0
libtpu: 0.0.40
codegen_flags: <defaults>
</compile_context>

<pallas_src>
import math

import jax
import jax.numpy as jnp
from jax import lax
from jax.experimental import pallas as pl
from jax.experimental.pallas import tpu as pltpu


def _round_up(a: int, b: int) -> int:
    return (a + b - 1) // b * b


def prepare_embedding_table(emb_table: jax.Array):
    """Pad d_model up to a multiple of 128 ONCE (call outside the per-step forward)."""
    _, d_model = emb_table.shape
    d_pad = _round_up(d_model, 128)
    if d_pad != d_model:
        emb_table = jnp.pad(emb_table, ((0, 0), (0, d_pad - d_model)))
    return emb_table, d_model


def _make_resident_kernel(T: int, vocab: int, scale: float):
    """Small-table path: whole table resident in VMEM, one-hot MXU gather."""

    def kernel(ids_ref, emb_ref, out_ref):
        # ids_ref: (T, 1) int32   emb_ref: (vocab, d_pad)   out_ref: (T, d_pad)
        ids_col = ids_ref[...]                                        # (T, 1)
        one_hot = (ids_col == lax.broadcasted_iota(jnp.int32, (T, vocab), 1)
                   ).astype(emb_ref.dtype)                            # (T, vocab)
        rows = jnp.dot(one_hot, emb_ref[...], preferred_element_type=jnp.float32)
        out_ref[...] = (rows * scale).astype(out_ref.dtype)

    return kernel


def _make_gather_kernel(T: int, scale: float):
    """Large-table path: per-row HBM DMAs, double-buffered across grid steps."""

    def kernel(ids_ref, nids_ref, emb_hbm, out_ref, rows, sems):
        # ids_ref / nids_ref : (1, T) int32 SMEM blocks (this block / next block ids)
        # emb_hbm            : (vocab, d_pad) raw HBM ref
        # out_ref            : (T, d_pad) output tile
        # rows               : (2, T, d_pad) VMEM double-buffered gather scratch
        # sems               : (2,) DMA semaphores, one aggregate sem per slot
        i = pl.program_id(1)
        n = pl.num_programs(1)
        slot = i % 2

        def start_gathers(src_ids_ref, dst_slot):
            @pl.loop(0, T)
            def _(t):
                row = src_ids_ref[0, t]
                pltpu.make_async_copy(
                    emb_hbm.at[row], rows.at[dst_slot, t], sems.at[dst_slot]
                ).start()

        # Prime the pipeline on the first block of this core's chunk.
        @pl.when(i == 0)
        def _prime():
            start_gathers(ids_ref, 0)

        # Start next block's gathers into the other slot before waiting on ours,
        # so their HBM latency hides behind this block's wait + store + writeback.
        @pl.when(i + 1 < n)
        def _prefetch_next():
            start_gathers(nids_ref, 1 - slot)

        # Single aggregate wait on all T row copies of this slot: all copies share
        # one semaphore, so one (T, d_pad)-sized wait covers them (no per-row
        # scalar work / SMEM id reads in the wait path).
        pltpu.make_async_copy(rows.at[slot], rows.at[slot], sems.at[slot]).wait()

        out_ref[...] = (rows[slot].astype(jnp.float32) * scale).astype(out_ref.dtype)

    return kernel


def input_embeddings(
    x: jax.Array,
    emb_table: jax.Array,
    *,
    d_model: int | None = None,
    block_tokens: int = 256,
    table_in_vmem: bool | None = None,
) -> jax.Array:
    """Pallas equivalent of InputEmbeddings.forward: emb[x] * sqrt(d_model).

    x         : (B, S) integer token ids
    emb_table : (vocab, d_model) or (vocab, d_pad) (from prepare_embedding_table)
    d_model   : logical model dim (defaults to emb_table.shape[1])
    """
    B, S = x.shape
    vocab, d_stored = emb_table.shape
    if d_model is None:
        d_model = d_stored
    if d_stored % 128 != 0:
        # Fallback; prefer prepare_embedding_table() once outside the step function.
        emb_table, _ = prepare_embedding_table(emb_table)
    d_pad = emb_table.shape[1]
    itemsize = emb_table.dtype.itemsize
    scale = float(math.sqrt(d_model))

    n_tok = B * S
    n_tok8 = _round_up(max(n_tok, 8), 8)

    # Token-block size T: sublane-dense, big enough to amortize per-step overhead,
    # small enough that 2x gather scratch + 2x output double-buffer fits v7x VMEM.
    T = min(_round_up(block_tokens, 8), n_tok8)
    VMEM_BUDGET = 24 * 1024 * 1024
    while T > 8 and 4 * T * d_pad * itemsize > VMEM_BUDGET:
        T = max(8, _round_up(T // 2, 8))
    if n_tok8 <= T and n_tok8 >= 16:
        # Prefer >= 2 token blocks so both TensorCores get work on v7x.
        T = max(8, _round_up((n_tok8 + 1) // 2, 8))
    n_blk = (n_tok8 + T - 1) // T

    # Clamp ids before any HBM DMA (nn.Embedding would raise on OOB ids).
    ids = jnp.clip(x.reshape(-1).astype(jnp.int32), 0, vocab - 1)

    table_bytes = vocab * d_pad * itemsize
    if table_in_vmem is None:
        table_in_vmem = (table_bytes <= 8 * 1024 * 1024) and (vocab <= 4096)

    if table_in_vmem:
        # ---- small-table path: VMEM-resident table, one-hot MXU gather ----
        n_tok_p = n_blk * T
        ids_col = jnp.pad(ids, (0, n_tok_p - n_tok)).reshape(n_tok_p, 1)
        vmem_limit = int(min(
            48 * 1024 * 1024,
            max(16 * 1024 * 1024,
                2 * table_bytes + 4 * T * d_pad * itemsize + 2 * T * vocab * 4 + (4 << 20)),
        ))
        out_flat = pl.pallas_call(
            _make_resident_kernel(T, vocab, scale),
            out_shape=jax.ShapeDtypeStruct((n_tok_p, d_pad), emb_table.dtype),
            grid_spec=pltpu.PrefetchScalarGridSpec(
                num_scalar_prefetch=0,
                grid=(n_blk,),
                in_specs=[
                    pl.BlockSpec((T, 1), lambda i: (i, 0)),            # per-block ids
                    pl.BlockSpec((vocab, d_pad), lambda i: (0, 0)),    # resident table
                ],
                out_specs=pl.BlockSpec((T, d_pad), lambda i: (i, 0)),
            ),
            compiler_params=pltpu.CompilerParams(
                dimension_semantics=("parallel",),
                vmem_limit_bytes=vmem_limit,
            ),
        )(ids_col, emb_table)
    else:
        # ---- large-table path: HBM gather, cross-step double-buffered DMAs ----
        n_outer = 2 if n_blk >= 2 else 1          # megacore-friendly outer split
        n_inner = (n_blk + n_outer - 1) // n_outer
        n_blk_p = n_outer * n_inner
        n_tok_p = n_blk_p * T
        ids2d = jnp.pad(ids, (0, n_tok_p - n_tok)).reshape(n_blk_p, T)
        # One extra row so the "next block ids" spec never indexes out of range.
        ids2d = jnp.concatenate([ids2d, jnp.zeros((1, T), jnp.int32)], axis=0)

        vmem_limit = int(min(
            48 * 1024 * 1024,
            max(16 * 1024 * 1024, 6 * T * d_pad * itemsize),
        ))
        cur_spec = pl.BlockSpec(
            (1, T), lambda o, i: (o * n_inner + i, 0),
            memory_space=pltpu.MemorySpace.SMEM)
        nxt_spec = pl.BlockSpec(
            (1, T), lambda o, i: (o * n_inner + i + 1, 0),
            memory_space=pltpu.MemorySpace.SMEM)

        out_flat = pl.pallas_call(
            _make_gather_kernel(T, scale),
            out_shape=jax.ShapeDtypeStruct((n_tok_p, d_pad), emb_table.dtype),
            grid_spec=pltpu.PrefetchScalarGridSpec(
                num_scalar_prefetch=0,
                grid=(n_outer, n_inner),
                in_specs=[
                    cur_spec,
                    nxt_spec,
                    pl.BlockSpec(memory_space=pl.ANY),   # table stays in HBM
                ],
                out_specs=pl.BlockSpec(
                    (T, d_pad), lambda o, i: (o * n_inner + i, 0)),
                scratch_shapes=[
                    pltpu.VMEM((2, T, d_pad), emb_table.dtype),
                    pltpu.SemaphoreType.DMA((2,)),
                ],
            ),
            compiler_params=pltpu.CompilerParams(
                dimension_semantics=("parallel", "arbitrary"),
                vmem_limit_bytes=vmem_limit,
            ),
        )(ids2d, ids2d, emb_table)

    return out_flat[:n_tok, :d_model].reshape(B, S, d_model)


if __name__ == "__main__":
    B, S = 2, 8
    vocab_size, d_model = 64, 32

    key = jax.random.PRNGKey(0)
    k_emb, k_ids, k_ids2 = jax.random.split(key, 3)

    # nn.Embedding default init ~ N(0, 1).
    emb_table = jax.random.normal(k_emb, (vocab_size, d_model), dtype=jnp.float32)
    x = jax.random.randint(k_ids, (B, S), 0, vocab_size, dtype=jnp.int32)

    # One-time weight prep (pads d_model to a lane-dense multiple of 128).
    emb_prepared, d_model_real = prepare_embedding_table(emb_table)

    def ref_fn(ids):
        return emb_table[ids] * math.sqrt(d_model_real)

    # Path 1 (auto-selected for this tiny table): VMEM-resident one-hot gather.
    out = input_embeddings(x, emb_prepared, d_model=d_model_real)
    out = jax.block_until_ready(out)
    assert out.shape == (B, S, d_model_real)
    assert jnp.allclose(out, ref_fn(x), atol=1e-5, rtol=1e-5)

    # Path 2 (forced): HBM gather with cross-step double-buffered row DMAs.
    # Small block_tokens so the prime -> prefetch -> wait pipeline runs for
    # several inner grid steps.
    x2 = jax.random.randint(k_ids2, (B, 32), 0, vocab_size, dtype=jnp.int32)
    out2 = input_embeddings(x2, emb_prepared, d_model=d_model_real,
                            block_tokens=16, table_in_vmem=False)
    out2 = jax.block_until_ready(out2)
    assert out2.shape == (B, 32, d_model_real)
    assert jnp.allclose(out2, ref_fn(x2), atol=1e-5, rtol=1e-5)

    print("KERNEL_OK")
</pallas_src>

<mosaic_0001>
module attributes {stable_mosaic.version = 11 : i64} {
  func.func @kernel(%arg0: i32, %arg1: memref<8x1xi32, #tpu.memory_space<vmem>>, %arg2: memref<64x128xf32, #tpu.memory_space<vmem>>, %arg3: memref<8x128xf32, #tpu.memory_space<vmem>>) attributes {dimension_semantics = [#tpu.dimension_semantics<parallel>], iteration_bounds = array<i64: 2>, scalar_prefetch = 0 : i64, scratch_operands = 0 : i64, tpu.core_type = #tpu.core_type<tc>, window_params = [{transform_indices = @transform_0, window_bounds = array<i64: 8, 1>}, {pipeline_mode = #tpu.pipeline_mode<synchronous>, transform_indices = @transform_1, window_bounds = array<i64: 64, 128>}, {transform_indices = @transform_2, window_bounds = array<i64: 8, 128>}]} {
    %c0 = arith.constant 0 : index
    %c0_0 = arith.constant 0 : index
    %0 = vector.load %arg1[%c0, %c0_0] : memref<8x1xi32, #tpu.memory_space<vmem>>, vector<8x1xi32>
    %1 = tpu.iota {dimensions = array<i32: 1>} : vector<8x64xi32>
    %2 = vector.broadcast %0 : vector<8x1xi32> to vector<8x64xi32>
    %3 = arith.cmpi eq, %2, %1 : vector<8x64xi32>
    %4 = arith.extui %3 : vector<8x64xi1> to vector<8x64xi32>
    %5 = arith.sitofp %4 : vector<8x64xi32> to vector<8x64xf32>
    %c0_1 = arith.constant 0 : index
    %c0_2 = arith.constant 0 : index
    %6 = vector.load %arg2[%c0_1, %c0_2] : memref<64x128xf32, #tpu.memory_space<vmem>>, vector<64x128xf32>
    %cst = arith.constant dense<0.000000e+00> : vector<8x128xf32>
    %7 = tpu.matmul %5, %6, %cst {dimension_numbers = #tpu.dot_dimension_numbers<[1], [0], [0], [1], [0, 0, 1, 1], [], []>} : vector<8x64xf32>, vector<64x128xf32>, vector<8x128xf32> -> vector<8x128xf32>
    %cst_3 = arith.constant 5.65685415 : f32
    %8 = vector.broadcast %cst_3 : f32 to vector<8x128xf32>
    %9 = arith.mulf %7, %8 : vector<8x128xf32>
    %c0_4 = arith.constant 0 : index
    %c0_5 = arith.constant 0 : index
    %10 = vector.load %arg3[%c0_4, %c0_5] : memref<8x128xf32, #tpu.memory_space<vmem>>, vector<8x128xf32>
    tpu.vector_store %arg3[%c0_4, %c0_5], %9 {strides = array<i32>} : memref<8x128xf32, #tpu.memory_space<vmem>>, vector<8x128xf32>,
    return
  }
  func.func @transform_0(%arg0: i32) -> (i32, i32) {
    %c0_i32 = arith.constant 0 : i32
    %c0_i32_0 = arith.constant 0 : i32
    return %arg0, %c0_i32 : i32, i32
  }
  func.func @transform_1(%arg0: i32) -> (i32, i32) {
    %c0_i32 = arith.constant 0 : i32
    %c0_i32_0 = arith.constant 0 : i32
    %c0_i32_1 = arith.constant 0 : i32
    return %c0_i32, %c0_i32_0 : i32, i32
  }
  func.func @transform_2(%arg0: i32) -> (i32, i32) {
    %c0_i32 = arith.constant 0 : i32
    %c0_i32_0 = arith.constant 0 : i32
    return %arg0, %c0_i32 : i32, i32
  }
}

</mosaic_0001>

<bundles_post_ra>
// kernel: tpu_custom_call.1
= control target key start
LH: loop header
LB: loop body
LE: loop exit
PB: predicated region body
PF: predicated region fallthrough
CT: control target
= control target key end

     0   :  { %7 = vsyncpa [#allocation3], 0  ;;  %s697_s0 = inlined_call_operand.vmem [shape: s32[16,1], index: 0, kind: input, shape index: {}]   ;;  %s698_s1 = inlined_call_operand.hbm [shape: f32[64,128], index: 1, kind: input, shape index: {}]   ;;  %s699_s2 = inlined_call_operand.hbm [shape: f32[16,128], index: 2, kind: output, shape index: {}]  }
   0x1   :  { %8 = vsyncpa [#allocation4], 0 }
   0x2   :  { %10 = vsyncpa [#allocation4 + $0x1], 0  ;;  %s562_s9 = smov 0   ;;  %s564_s10 = smov 0  }
   0x3   :  { %s566_s11 = smov 0   ;;  %s568_s12 = smov 0  }
   0x4 LB: > { %s583_s13 = sadd.s32 4294967295, %s537_s12   ;;  %s332_s14 = sadd.s32 4294967294, %s537_s12   ;;  %s537_s12 = sphi %s568_s12, %s715_s12   ;;  %s533_s11 = sphi %s566_s11, %s714_s11   ;;  %s529_s10 = sphi %s564_s10, %s713_s10   ;;  %s525_s9 = sphi %s562_s9, %s712_s9  }
   0x5   : > { %s587_s15 = sadd.s32 1, %s537_s12   ;;  %s70_s16 = sadd.s32 1, %s533_s11 }
   0x6   : > { %s67_s17 = ssub.s32 %s537_s12, %s587_s15  ;;  %p80_p0 = scmp.ne.s32.totalorder %s533_s11, %s529_s10 }
   0x7   : > { %p68_p1 = scmp.eq.s32.totalorder %s67_s17, 0  ;;  %p81_p2 = scmp.eq.s32.totalorder %s583_s13, 1 }
   0x8   : > { %p86_p3 = scmp.ne.s32.totalorder %s529_s10, %s525_s9  ;;  %p87_p4 = scmp.eq.s32.totalorder %s332_s14, 1 }
   0x9   : > { %s598_s18 = scalar_select %p68_p1, %s533_s11, %s70_s16  }
   0xa   : > { %p600_p5 = por %p81_p2, %p80_p0  ;;  %p604_p6 = por %p87_p4, %p86_p3 }
   0xb   : > { %p333_p7 = scmp.ge.s32.totalorder %s537_s12, 1  ;;  %p94_p8 = scmp.lt.s32.totalorder %s537_s12, 3 }
   0xc   : > { %s703_s19 = scalar_select %p600_p5, 1, 0 }
   0xd   : > { %s704_s20 = scalar_select %p604_p6, 1, 0 }
   0xe   : > { %p700_p9 = scmp.eq.s32.totalorder %s583_s13, 0  ;;  %p611_p10 = pnand %p333_p7, %p94_p8 }
   0xf   : > { %s539_s22 = smov [#allocation2]   ;;  %s443_s27 = scalar_lea.hbm %s698_s1, 1024 }
  0x10   : > { %s705_s21 = scalar_select %p611_p10, 1, 0 }
  0x11   : > { %s106_s23 = sshll.u32 %s539_s22, 4  ;;  %p392_p11 = pneg %p611_p10  ;;  %s107_s23 = int_to_ptr.vmem [resolvable:$true] %s106_s23 }
  0x12   : > { %p444_p13 = scmp.ne.s32.totalorder %s698_s1, %s443_s27  ;;  %p450_p3 = scmp.lt.u32.totalorder %s443_s27, %s698_s1 }
  0x13   : > { %p619_p12 = pnand %p700_p9, %p392_p11 }
  0x15   : > { %p445_p0 = pneg %p619_p12 }
  0x17   : > { %p446_p1 = pnand %p445_p0, %p444_p13 }
  0x19   : > { %p447_p2 = pneg %p446_p1 }
  0x1b   : > { %p452_p4 = pnand %p450_p3, %p447_p2 }
  0x1d   : > { %455 = shalt.err (!%p452_p4)
}
  0x1e   : > { %s456_s4 = scalar_lea.vmem %s107_s23, 1024  ;;  %p464_p9 = scmp.lt.s32.totalorder %s107_s23, %s107_s23 }
  0x1f   : > { %p457_p7 = scmp.ne.s32.totalorder %s107_s23, %s456_s4  ;;  %p465_p6 = scmp.lt.s32.totalorder %s456_s4, %s456_s4 }
  0x21   : > { %p459_p8 = pnand %p457_p7, %p445_p0  ;;  %p466_p5 = por %p465_p6, %p464_p9 }
  0x23   : > { %p460_p11 = pneg %p459_p8 }
  0x25   : > { %p467_p10 = pnand %p466_p5, %p460_p11 }
  0x27   : > { %470 = shalt.err (!%p467_p10)
}
  0x28   : > { %s540_s5 = smov 128   ;;  %s541_s6 = smov 8  }
  0x29   : > { %395 = dma.hbm_to_vmem [thread:$0]  (!%p619_p12), %s698_s1, 1024, %s107_s23, [#allocation3], %s540_s5, %s540_s5, %s541_s6  }
  0x2a   : > { %p707_p13 = scmp.ne.s32.totalorder %s705_s21, 0 }
  0x2b   : > { %p708_p1 = scmp.eq.s32.totalorder (!%p707_p13), %s583_s13, 0 }
  0x2c   : > { %129 = sbr.rel (%p707_p13) target bundleno = 417 (0x1a1), region = 28 }
  0x33   : > { %516 = dma.done.wait (%p708_p1), [#allocation3], 1024   ;;  %p709_p0 = pmov %p708_p1 }
  0x34   : > { %p150_p5 = scmp.lt.s32.totalorder %s583_s13, 1  ;;  %v542_v0 = vmov 0   ;;  %v543_v1 = vmov 0.0|0.0   ;;  %v163_v3 = vld [vmem:[#allocation2] sm:$0xff]  ;;  %v164_v4 = vld [vmem:[#allocation2 + $0x8] sm:$0xff]  ;;  %v165_v6 = vld [vmem:[#allocation2 + $0x10] sm:$0xff]  ;;  %v155_v16 = vlaneseq }
  0x35   : > { %518 = vsyncadd (%p709_p0), [#allocation3], 4294966272  ;;  %442 = vset.pattern.permute.xlu0 %v542_v0  ;;  %374 = vmatprep.subr.bf16.mxu0 %v543_v1  ;;  %v375_v5 = vpack.c.bf16 %v164_v4, %v163_v3  ;;  %v166_v7 = vld [vmem:[#allocation2 + $0x18] sm:$0xff]  ;;  %vm544_vm0 = vmmov 0   ;;  %v545_v8 = vmov 0.0   ;;  %v167_v10 = vld [vmem:[#allocation2 + $0x20] sm:$0xff] }
  0x36   : > { %s151_s14 = scalar_select %p150_p5, %s583_s13, 1  ;;  %371 = vmatprep.mubr.msk.f32.mxu0 %vm544_vm0, %v545_v8  ;;  %v378_v9 = vpack.c.bf16 %v166_v7, %v165_v6  ;;  %v168_v11 = vld [vmem:[#allocation2 + $0x28] sm:$0xff]  ;;  %v169_v13 = vld [vmem:[#allocation2 + $0x30] sm:$0xff]  ;;  %v170_v14 = vld [vmem:[#allocation2 + $0x38] sm:$0xff]  ;;  %v156_v17 = vand.u32 127, %v155_v16  ;;  %vm171_vm1 = vcmask 523264  }
  0x37   : > { %376 = vmatpush3.bf16.msra.mxu0 %v375_v5  ;;  %v381_v12 = vpack.c.bf16 %v168_v11, %v167_v10  ;;  %v384_v15 = vpack.c.bf16 %v170_v14, %v169_v13  ;;  %s147_s23 = sand.u32 1, %s529_s10   ;;  %s343_s25 = sshll.u32 %s583_s13, 7 }
  0x38   : > { %s339_s16 = sshll.u32 %s151_s14, 3  ;;  %377 = vmatprep.subr.bf16.mxu0 %v543_v1  ;;  %s338_s24 = sshll.u32 %s147_s23, 3 }
  0x39   : > { %s153_s21 = scalar_lea.vmem %s697_s0, %s339_s16  ;;  %s149_s26 = scalar_lea.vmem [#allocation5], %s338_s24 }
  0x3a   : > { %v154_v2 = vld [vmem:[%s153_s21] sm:$0xff]  ;;  %s261_s27 = sshll.u32 %s149_s26, 4  ;;  %s655_s30 = scalar_lea.hbm %s699_s2, %s343_s25  ;;  %s657_s27 = int_to_ptr.vmem [resolvable:$true] %s261_s27 }
  0x3b   : > { %158 = vperm.xlu0 %442, %v154_v2   ;;  %379 = vmatpush3.bf16.msra.mxu0 %v378_v9  ;;  %s248_s3 = scalar_lea.sflag [#allocation4], %s147_s23  ;;  %s471_s4 = scalar_lea.vmem %s657_s27, 128 }
  0x3c   : > { %380 = vmatprep.subr.bf16.mxu0 %v543_v1  ;;  %p472_p6 = scmp.ne.s32.totalorder %s657_s27, %s471_s4  ;;  %p710_p9 = scmp.ne.s32.totalorder %s703_s19, 0 }
  0x3d   : > { %s546_s13 = smov [#allocation5]  }
  0x3e   : > { %p473_p10 = pnand %p472_p6, %p710_p9  ;;  %s475_s5 = sshll.u32 %s546_s13, 4  ;;  %s476_s5 = int_to_ptr.vmem [resolvable:$false] %s475_s5 }
  0x3f   : > { %382 = vmatpush3.bf16.msra.mxu0 %v381_v12  ;;  %s477_s6 = scalar_lea.vmem %s476_s5, 256  ;;  %p478_p2 = scmp.lt.s32.totalorder %s657_s27, %s476_s5 }
  0x40   : > { %383 = vmatprep.subr.bf16.mxu0 %v543_v1  ;;  %p474_p12 = pneg %p473_p10  ;;  %p479_p3 = scmp.lt.s32.totalorder %s477_s6, %s471_s4 }
  0x42   : > { %p480_p4 = por %p479_p3, %p478_p2 }
  0x43   : > { %385 = vmatpush3.bf16.msra.mxu0 %v384_v15 }
  0x44   : > { %p481_p7 = pnand %p480_p4, %p474_p12 }
  0xba   : > { %v159_v18 = vpop.permute.xlu0 %158 }
  0xbb   : > { %vm160_vm2 = vcmp.eq.s32.totalorder %v159_v18, %v156_v17 }
  0xbc   : > { %v340_v19 = vsel %vm160_vm2, 1.0, %v545_v8 }
  0xbd   : > { %372 = vmatmul.mubr.msk.f32.vlgmr.msra.gmra.mrb[0].mxu0 %vm171_vm1, %v340_v19 }
 0x190   : > { %v241_v20 = vpop.f32.mrb[0].mxu0 }
 0x191   : > { %v245_v21 = vmul.f32 5.656854, %v241_v20  ;;  %v373_v22 = vpop.f32.mrb[1].mxu0 }
 0x193   : > { %246 = vst [vmem:[%s149_s26] sm:$0xff] %v245_v21 }
 0x194   : > { %484 = shalt.err (!%p481_p7)
}
 0x195   : > { %s485_s7 = scalar_lea.hbm %s655_s30, 128  ;;  %s489_s16 = scalar_lea.hbm %s699_s2, 256 }
 0x196   : > { %p486_p8 = scmp.ne.s32.totalorder %s655_s30, %s485_s7  ;;  %p490_p1 = scmp.lt.u32.totalorder %s655_s30, %s699_s2 }
 0x197   : > { %p491_p0 = scmp.lt.u32.totalorder %s489_s16, %s485_s7  ;;  %p493_p6 = scmp.lt.u32.totalorder %s485_s7, %s655_s30 }
 0x198   : > { %p487_p11 = pnand %p486_p8, %p710_p9 }
 0x199   : > { %p492_p5 = por %p491_p0, %p490_p1 }
 0x19a   : > { %p488_p13 = pneg %p487_p11 }
 0x19b   : > { %p494_p10 = por %p493_p6, %p492_p5 }
 0x19d   : > { %p495_p12 = pnand %p494_p10, %p488_p13 }
 0x19f   : > { %498 = shalt.err (!%p495_p12)
}
 0x1a0   : > { %390 = dma.vmem_to_hbm [thread:$0]  (%p710_p9), %s657_s27, 128, %s655_s30, %s248_s3  }
 0x1a1 PF: > { %p402_p2 = scmp.ge.s32.totalorder %s537_s12, 2  ;;  %s273_s21 = sand.u32 1, %s525_s9  }
 0x1a2   : > { %p711_p3 = scmp.ne.s32.totalorder %s704_s20, 0  ;;  %s274_s23 = scalar_lea.sflag [#allocation4], %s273_s21 }
 0x1a4   : > { %p397_p4 = pnand %p402_p2, %p711_p3 }
 0x1a6   : > { %520 = dma.done.wait (!%p397_p4), %s274_s23, 128  }
 0x1a7   : > { %522 = vsyncadd (!%p397_p4), %s274_s23, 4294967168  ;;  %p13_p7 = scmp.ge.s32.totalorder %s587_s15, 4   ;;  %s712_s9 = smov %s529_s10 }
 0x1a8   : > { %s713_s10 = smov %s533_s11  ;;  %s714_s11 = smov %s598_s18 }
 0x1a9   : > { %s715_s12 = smov %s587_s15  ;;  %15 = sbr.rel (!%p13_p7) target bundleno = 4 (0x4), region = 68 }
 0x1b0   :  { %279 = vsyncpa [#allocation3], 1 }
 0x1b1   :  { %281 = vsyncpa [#allocation3 + $0x1], 1 }
 0x1b2   :  { %282 = vsyncpa [#allocation4], 1 }
 0x1b3   :  { %284 = vsyncpa [#allocation4 + $0x1], 1 }

</bundles_post_ra>
